<compile_context>
chip_gen: v7x
topology: tpu7x:2x2x1
jax: 0.10.0
libtpu: 0.0.40
codegen_flags: <defaults>
</compile_context>

<pallas_src>
import math
from functools import partial
from typing import Any, Dict, Tuple

import jax
import jax.numpy as jnp
from jax.experimental import pallas as pl
from jax.experimental.pallas import tpu as pltpu

_EPSILON = 1e-3           # sample halts once cum_prob >= 1 - eps
_STATE_LANES = 128        # packed per-sample state width (one full lane group)
_LANE_CUM, _LANE_HALTED, _LANE_STEPS, _LANE_REM = 0, 1, 2, 3

_MAX_TILE_B = 256         # batch rows per block   (multiple of 8)
_MAX_TILE_D = 1024        # feature lanes per block (multiple of 128)
# VMEM budget @ (256,1024): acc(1MiB f32) + acc_out(1MiB) + val(0.5MiB bf16)
# + state(2*128KiB) ~= 2.8MiB per step, ~5.6MiB double-buffered -> safely under
# the 16/32 MiB scoped-VMEM defaults on v5e/v6e/v7x.


def _round_up(x: int, m: int) -> int:
    return ((x + m - 1) // m) * m


def _padded_dim(n: int, base: int, cap: int) -> Tuple[int, int]:
    """Return (padded_size, tile) with tile | padded_size, tile % base == 0."""
    tile = min(_round_up(max(n, 1), base), cap)
    return _round_up(max(n, 1), tile), tile


# ----------------------------------------------------------------------------
# Pallas kernel: fused ACT update on one (batch-tile, feature-tile) block
# ----------------------------------------------------------------------------
def _act_step_kernel(p_ref, state_ref, acc_ref, val_ref, state_out_ref, acc_out_ref):
    """
    p_ref         : (TB, 1)    f32   halting probability column
    state_ref     : (TB, 128)  f32   packed state: lanes [cum, halted, steps, rem]
    acc_ref       : (TB, TD)   f32   accumulator slab block
    val_ref       : (TB, TD)   f32/bf16 step-value slab block
    state_out_ref : (TB, 128)  f32   (HBM-aliased with state_ref)
    acc_out_ref   : (TB, TD)   f32   (HBM-aliased with acc_ref)
    """
    p = p_ref[...]                                   # (TB, 1)
    st = state_ref[...]                              # (TB, 128)
    cum = st[:, _LANE_CUM:_LANE_CUM + 1]
    halted = st[:, _LANE_HALTED:_LANE_HALTED + 1]

    unhalted = 1.0 - halted
    crosses = jnp.where(cum + p >= 1.0 - _EPSILON, 1.0, 0.0)
    will_halt = crosses * unhalted
    remainder = 1.0 - cum
    # effective probability: clamp to remaining mass on the halting step,
    # zero once already halted.
    eff_p = (will_halt * remainder + (1.0 - will_halt) * p) * unhalted   # (TB, 1)

    # main (memory-bound) work: acc += eff_p * value, f32 accumulation.
    acc_out_ref[...] = acc_ref[...] + eff_p * val_ref[...].astype(jnp.float32)

    # Packed state update: independent of the feature tile, so compute it once
    # per batch tile.  The output block (index (i, 0)) is resident in VMEM
    # across the "arbitrary" feature axis and written back once per i.
    @pl.when(pl.program_id(1) == 0)
    def _():
        steps = st[:, _LANE_STEPS:_LANE_STEPS + 1]
        rem_total = st[:, _LANE_REM:_LANE_REM + 1]
        cum_new = cum + eff_p
        halted_new = jnp.maximum(halted, will_halt)
        steps_new = steps + unhalted
        rem_new = rem_total + will_halt * remainder
        lane = jax.lax.broadcasted_iota(jnp.int32, state_out_ref.shape, 1)
        state_out_ref[...] = jnp.where(
            lane == _LANE_CUM, cum_new,
            jnp.where(lane == _LANE_HALTED, halted_new,
                      jnp.where(lane == _LANE_STEPS, steps_new,
                                jnp.where(lane == _LANE_REM, rem_new, 0.0))))


# ----------------------------------------------------------------------------
# Jitted step wrapper: pack values, call the kernel, alias buffers in place
# ----------------------------------------------------------------------------
@partial(jax.jit, static_argnames=("value_dtype",), donate_argnums=(1, 2))
def _act_step_jit(p_raw, state, acc, *leaf_vals, value_dtype):
    nb = p_raw.ndim                                 # number of batch dims
    B = math.prod(p_raw.shape)
    B_pad = state.shape[0]
    D_pad = acc.shape[1]
    tile_b = min(B_pad, _MAX_TILE_B)
    tile_d = min(D_pad, _MAX_TILE_D)

    # halting probability as a (B_pad, 1) column
    p_col = p_raw.astype(jnp.float32).reshape(B, 1)
    if B_pad > B:
        p_col = jnp.pad(p_col, ((0, B_pad - B), (0, 0)))

    # concatenate all leaves into one lane-dense value slab (narrow dtype)
    flats = [v.reshape(B, math.prod(v.shape[nb:])).astype(value_dtype)
             for v in leaf_vals]
    val = flats[0] if len(flats) == 1 else jnp.concatenate(flats, axis=1)
    pad_r, pad_c = B_pad - B, D_pad - val.shape[1]
    if pad_r or pad_c:
        val = jnp.pad(val, ((0, pad_r), (0, pad_c)))

    grid = (B_pad // tile_b, D_pad // tile_d)

    state_out, acc_out = pl.pallas_call(
        _act_step_kernel,
        out_shape=(
            jax.ShapeDtypeStruct((B_pad, _STATE_LANES), jnp.float32),
            jax.ShapeDtypeStruct((B_pad, D_pad), jnp.float32),
        ),
        grid=grid,
        in_specs=[
            pl.BlockSpec((tile_b, 1), lambda i, j: (i, 0)),             # p column
            pl.BlockSpec((tile_b, _STATE_LANES), lambda i, j: (i, 0)),  # packed state
            pl.BlockSpec((tile_b, tile_d), lambda i, j: (i, j)),        # accumulators
            pl.BlockSpec((tile_b, tile_d), lambda i, j: (i, j)),        # step values
        ],
        out_specs=(
            pl.BlockSpec((tile_b, _STATE_LANES), lambda i, j: (i, 0)),
            pl.BlockSpec((tile_b, tile_d), lambda i, j: (i, j)),
        ),
        input_output_aliases={1: 0, 2: 1},   # state -> state_out, acc -> acc_out
        compiler_params=pltpu.CompilerParams(
            dimension_semantics=("parallel", "arbitrary"),
        ),
    )(p_col, state, acc, val)
    return state_out, acc_out


# ----------------------------------------------------------------------------
# Concrete ACT instance (state lives in JAX arrays; updates go through Pallas)
# ----------------------------------------------------------------------------
class PallasACT:
    def __init__(self, batch_shape, accumulator_templates, value_dtype=jnp.bfloat16):
        self.batch_shape = tuple(int(s) for s in batch_shape)
        self._nb = len(self.batch_shape)
        self._B = math.prod(self.batch_shape)
        self._value_dtype = value_dtype

        leaves, treedef = jax.tree_util.tree_flatten(accumulator_templates)
        if not leaves:
            raise ValueError("at least one accumulator template leaf is required")
        self._treedef = treedef
        self._leaf_shapes = [tuple(l.shape) for l in leaves]
        for s in self._leaf_shapes:
            if s[: self._nb] != self.batch_shape:
                raise ValueError(f"leaf shape {s} must start with batch_shape "
                                 f"{self.batch_shape}")
        self._feat_dims = [math.prod(s[self._nb:]) for s in self._leaf_shapes]
        self._offsets = []
        off = 0
        for d in self._feat_dims:
            self._offsets.append(off)
            off += d
        self._D = off

        self._B_pad, _ = _padded_dim(self._B, 8, _MAX_TILE_B)
        self._D_pad, _ = _padded_dim(self._D, 128, _MAX_TILE_D)

        # packed per-sample state: lanes [cum, halted, steps, remainder].
        # Padding rows start halted so should_continue() ignores them.
        row = jnp.arange(self._B_pad)[:, None]
        lane = jnp.arange(_STATE_LANES)[None, :]
        self._state = jnp.where(
            (row >= self._B) & (lane == _LANE_HALTED), 1.0, 0.0
        ).astype(jnp.float32)
        self._acc = jnp.zeros((self._B_pad, self._D_pad), jnp.float32)

        self._last_leaves = None
        self._finalized = False

    # -- AbstractACT contract --------------------------------------------
    @property
    def halted_batches(self) -> jnp.ndarray:
        return (self._state[: self._B, _LANE_HALTED] > 0.5).reshape(self.batch_shape)

    def get_statistics(self) -> Dict[str, Any]:
        s = self._state[: self._B]
        return {
            "cumulative_probability": s[:, _LANE_CUM].reshape(self.batch_shape),
            "steps": s[:, _LANE_STEPS].reshape(self.batch_shape),
            "remainders": s[:, _LANE_REM].reshape(self.batch_shape),
            "halted": self.halted_batches,
        }

    def step(self, halting_prob: jnp.ndarray, **outputs):
        if self._finalized:
            raise RuntimeError("step() called after finalize()")
        if tuple(halting_prob.shape) != self.batch_shape:
            raise ValueError("halting_prob must have shape batch_shape")
        leaves, treedef = jax.tree_util.tree_flatten(outputs)
        if treedef != self._treedef:
            raise ValueError("output pytree structure does not match templates")
        for l, s in zip(leaves, self._leaf_shapes):
            if tuple(l.shape) != s:
                raise ValueError(f"leaf shape {tuple(l.shape)} != template {s}")
        self._state, self._acc = _act_step_jit(
            halting_prob, self._state, self._acc, *leaves,
            value_dtype=self._value_dtype)
        self._last_leaves = leaves

    def should_continue(self) -> bool:
        # TODO(synk): the abstract contract returns a Python bool, forcing a
        # device->host sync every step; for a fully on-device ACT loop, drive
        # the caller's body with lax.while_loop instead of this method.
        return bool(jnp.any(self._state[:, _LANE_HALTED] < 0.5))

    def finalize(self) -> Dict[str, Any]:
        if (not self._finalized and self._last_leaves is not None
                and self.should_continue()):
            # Fold the remaining probability mass of still-unhalted samples into
            # the accumulators: a step with halting_prob == 1, which the kernel
            # clamps to the remaining mass (total halting mass per sample == 1).
            ones = jnp.ones(self.batch_shape, jnp.float32)
            self._state, self._acc = _act_step_jit(
                ones, self._state, self._acc, *self._last_leaves,
                value_dtype=self._value_dtype)
        self._finalized = True
        results = []
        for shape, d, off in zip(self._leaf_shapes, self._feat_dims, self._offsets):
            results.append(self._acc[: self._B, off:off + d].reshape(shape))
        return jax.tree_util.tree_unflatten(self._treedef, results)


# ----------------------------------------------------------------------------
# Factory (mirror of AbstractACTFactory.forward)
# ----------------------------------------------------------------------------
class PallasACTFactory:
    """Deterministic, parameter-free factory: builds a PallasACT instance."""

    def __init__(self, value_dtype=jnp.bfloat16):
        # values are streamed through the kernel in this dtype (f32 accumulate)
        self.value_dtype = value_dtype

    def forward(self, batch_shape, **accumulator_templates) -> PallasACT:
        return PallasACT(batch_shape, accumulator_templates,
                         value_dtype=self.value_dtype)

    __call__ = forward


# ----------------------------------------------------------------------------
# Pure-JAX reference (for correctness check in the demo)
# ----------------------------------------------------------------------------
def _reference_act(probs, outs_list, batch_shape):
    B = math.prod(batch_shape)
    cum = jnp.zeros((B,), jnp.float32)
    halted = jnp.zeros((B,), bool)
    accs = {k: jnp.zeros((B, math.prod(v.shape[len(batch_shape):])), jnp.float32)
            for k, v in outs_list[0].items()}
    for p, outs in zip(probs, outs_list):
        p = p.astype(jnp.float32).reshape(B)
        unhalted = (~halted).astype(jnp.float32)
        will_halt = ((cum + p) >= 1.0 - _EPSILON) & (~halted)
        remainder = 1.0 - cum
        eff = jnp.where(will_halt, remainder, p) * unhalted
        cum = cum + eff
        halted = halted | will_halt
        for k, v in outs.items():
            accs[k] = accs[k] + eff[:, None] * v.astype(jnp.float32).reshape(B, -1)
    if bool(jnp.any(~halted)):
        eff = jnp.where(~halted, 1.0 - cum, 0.0)
        cum = cum + eff
        for k, v in outs_list[-1].items():
            accs[k] = accs[k] + eff[:, None] * v.astype(jnp.float32).reshape(B, -1)
    results = {k: accs[k].reshape(outs_list[0][k].shape) for k in accs}
    return results, cum.reshape(batch_shape)


# ----------------------------------------------------------------------------
# Demo / smoke test
# ----------------------------------------------------------------------------
if __name__ == "__main__":
    key = jax.random.PRNGKey(0)
    batch_shape = (2, 4)          # flattened batch B = 8
    d_state, d_out = 32, 64       # concatenated feature slab = 96 -> padded 128

    templates = {
        "state": jnp.zeros(batch_shape + (d_state,), jnp.float32),
        "output": jnp.zeros(batch_shape + (d_out,), jnp.float32),
    }

    factory = PallasACTFactory()
    act = factory.forward(batch_shape, **templates)

    probs, outs_hist = [], []
    step_idx, max_steps = 0, 3    # small cap so finalize() folds remainders
    while act.should_continue() and step_idx < max_steps:
        key, kp, ks, ko = jax.random.split(key, 4)
        halting_prob = jax.random.uniform(kp, batch_shape, jnp.float32, 0.2, 0.6)
        outputs = {
            "state": jax.random.normal(ks, batch_shape + (d_state,), jnp.float32),
            "output": jax.random.normal(ko, batch_shape + (d_out,), jnp.float32),
        }
        act.step(halting_prob, **outputs)
        probs.append(halting_prob)
        outs_hist.append(outputs)
        step_idx += 1

    results = act.finalize()
    stats = act.get_statistics()
    jax.block_until_ready((results, stats))

    # shape checks
    assert results["state"].shape == batch_shape + (d_state,)
    assert results["output"].shape == batch_shape + (d_out,)
    # total halting mass must be ~1 per sample after finalize
    assert bool(jnp.all(jnp.abs(stats["cumulative_probability"] - 1.0) < 1e-5))
    # numerical check against a pure-JAX f32 reference (bf16 value traffic
    # introduces ~0.4% relative error at most on these O(1) magnitudes)
    ref_results, ref_cum = _reference_act(probs, outs_hist, batch_shape)
    assert bool(jnp.all(jnp.abs(stats["cumulative_probability"] - ref_cum) < 1e-5))
    for name in ("state", "output"):
        err = float(jnp.max(jnp.abs(results[name] - ref_results[name])))
        assert err < 5e-2, f"{name} mismatch vs reference: max abs err {err}"

    print("KERNEL_OK")
</pallas_src>

<mosaic_0001>
module attributes {stable_mosaic.version = 11 : i64} {
  func.func @_act_step_kernel(%arg0: i32, %arg1: i32, %arg2: memref<8x1xf32, #tpu.memory_space<vmem>>, %arg3: memref<8x128xf32, #tpu.memory_space<vmem>>, %arg4: memref<8x128xf32, #tpu.memory_space<vmem>>, %arg5: memref<8x128xbf16, #tpu.memory_space<vmem>>, %arg6: memref<8x128xf32, #tpu.memory_space<vmem>>, %arg7: memref<8x128xf32, #tpu.memory_space<vmem>>) attributes {dimension_semantics = [#tpu.dimension_semantics<parallel>, #tpu.dimension_semantics<arbitrary>], iteration_bounds = array<i64: 1, 1>, scalar_prefetch = 0 : i64, scratch_operands = 0 : i64, tpu.core_type = #tpu.core_type<tc>, window_params = [{transform_indices = @transform_0, window_bounds = array<i64: 8, 1>}, {transform_indices = @transform_1, window_bounds = array<i64: 8, 128>}, {transform_indices = @transform_2, window_bounds = array<i64: 8, 128>}, {transform_indices = @transform_3, window_bounds = array<i64: 8, 128>}, {transform_indices = @transform_4, window_bounds = array<i64: 8, 128>}, {transform_indices = @transform_5, window_bounds = array<i64: 8, 128>}]} {
    %c0 = arith.constant 0 : index
    %c0_0 = arith.constant 0 : index
    %0 = vector.load %arg2[%c0, %c0_0] : memref<8x1xf32, #tpu.memory_space<vmem>>, vector<8x1xf32>
    %c0_1 = arith.constant 0 : index
    %c0_2 = arith.constant 0 : index
    %1 = vector.load %arg3[%c0_1, %c0_2] : memref<8x128xf32, #tpu.memory_space<vmem>>, vector<8x128xf32>
    %2 = vector.extract_strided_slice %1 {offsets = [0, 0], sizes = [8, 1], strides = [1, 1]} : vector<8x128xf32> to vector<8x1xf32>
    %3 = vector.extract_strided_slice %1 {offsets = [0, 1], sizes = [8, 1], strides = [1, 1]} : vector<8x128xf32> to vector<8x1xf32>
    %cst = arith.constant 1.000000e+00 : f32
    %4 = vector.broadcast %cst : f32 to vector<8x1xf32>
    %5 = arith.subf %4, %3 : vector<8x1xf32>
    %6 = arith.addf %2, %0 : vector<8x1xf32>
    %cst_3 = arith.constant 9.990000e-01 : f32
    %7 = vector.broadcast %cst_3 : f32 to vector<8x1xf32>
    %8 = arith.cmpf oge, %6, %7 : vector<8x1xf32>
    %cst_4 = arith.constant 1.000000e+00 : f32
    %cst_5 = arith.constant 0.000000e+00 : f32
    %9 = vector.broadcast %cst_4 : f32 to vector<8x1xf32>
    %10 = vector.broadcast %cst_5 : f32 to vector<8x1xf32>
    %11 = arith.select %8, %9, %10 : vector<8x1xi1>, vector<8x1xf32>
    %12 = arith.mulf %11, %5 : vector<8x1xf32>
    %cst_6 = arith.constant 1.000000e+00 : f32
    %13 = vector.broadcast %cst_6 : f32 to vector<8x1xf32>
    %14 = arith.subf %13, %2 : vector<8x1xf32>
    %15 = arith.mulf %12, %14 : vector<8x1xf32>
    %cst_7 = arith.constant 1.000000e+00 : f32
    %16 = vector.broadcast %cst_7 : f32 to vector<8x1xf32>
    %17 = arith.subf %16, %12 : vector<8x1xf32>
    %18 = arith.mulf %17, %0 : vector<8x1xf32>
    %19 = arith.addf %15, %18 : vector<8x1xf32>
    %20 = arith.mulf %19, %5 : vector<8x1xf32>
    %c0_8 = arith.constant 0 : index
    %c0_9 = arith.constant 0 : index
    %21 = vector.load %arg4[%c0_8, %c0_9] : memref<8x128xf32, #tpu.memory_space<vmem>>, vector<8x128xf32>
    %c0_10 = arith.constant 0 : index
    %c0_11 = arith.constant 0 : index
    %22 = vector.load %arg5[%c0_10, %c0_11] : memref<8x128xbf16, #tpu.memory_space<vmem>>, vector<8x128xbf16>
    %23 = arith.extf %22 : vector<8x128xbf16> to vector<8x128xf32>
    %24 = vector.broadcast %20 : vector<8x1xf32> to vector<8x128xf32>
    %25 = arith.mulf %24, %23 : vector<8x128xf32>
    %26 = arith.addf %21, %25 : vector<8x128xf32>
    %c0_12 = arith.constant 0 : index
    %c0_13 = arith.constant 0 : index
    %27 = vector.load %arg7[%c0_12, %c0_13] : memref<8x128xf32, #tpu.memory_space<vmem>>, vector<8x128xf32>
    tpu.vector_store %arg7[%c0_12, %c0_13], %26 {strides = array<i32>} : memref<8x128xf32, #tpu.memory_space<vmem>>, vector<8x128xf32>,
    %c0_i32 = arith.constant 0 : i32
    %28 = arith.cmpi eq, %arg1, %c0_i32 : i32
    %29 = arith.extui %28 : i1 to i32
    %c0_i32_14 = arith.constant 0 : i32
    %30 = arith.cmpi ne, %29, %c0_i32_14 : i32
    scf.if %30 {
      %31 = vector.extract_strided_slice %1 {offsets = [0, 2], sizes = [8, 1], strides = [1, 1]} : vector<8x128xf32> to vector<8x1xf32>
      %32 = vector.extract_strided_slice %1 {offsets = [0, 3], sizes = [8, 1], strides = [1, 1]} : vector<8x128xf32> to vector<8x1xf32>
      %33 = arith.addf %2, %20 : vector<8x1xf32>
      %34 = arith.maximumf %3, %12 : vector<8x1xf32>
      %35 = arith.addf %31, %5 : vector<8x1xf32>
      %36 = arith.mulf %12, %14 : vector<8x1xf32>
      %37 = arith.addf %32, %36 : vector<8x1xf32>
      %38 = tpu.iota {dimensions = array<i32: 1>} : vector<8x128xi32>
      %c0_i32_15 = arith.constant 0 : i32
      %39 = vector.broadcast %c0_i32_15 : i32 to vector<8x128xi32>
      %40 = arith.cmpi eq, %38, %39 : vector<8x128xi32>
      %c1_i32 = arith.constant 1 : i32
      %41 = vector.broadcast %c1_i32 : i32 to vector<8x128xi32>
      %42 = arith.cmpi eq, %38, %41 : vector<8x128xi32>
      %c2_i32 = arith.constant 2 : i32
      %43 = vector.broadcast %c2_i32 : i32 to vector<8x128xi32>
      %44 = arith.cmpi eq, %38, %43 : vector<8x128xi32>
      %c3_i32 = arith.constant 3 : i32
      %45 = vector.broadcast %c3_i32 : i32 to vector<8x128xi32>
      %46 = arith.cmpi eq, %38, %45 : vector<8x128xi32>
      %cst_16 = arith.constant 0.000000e+00 : f32
      %47 = vector.shape_cast %37 : vector<8x1xf32> to vector<8x1xf32>
      %48 = vector.broadcast %47 : vector<8x1xf32> to vector<8x128xf32>
      %49 = vector.broadcast %cst_16 : f32 to vector<8x128xf32>
      %50 = arith.select %46, %48, %49 : vector<8x128xi1>, vector<8x128xf32>
      %51 = vector.shape_cast %35 : vector<8x1xf32> to vector<8x1xf32>
      %52 = vector.broadcast %51 : vector<8x1xf32> to vector<8x128xf32>
      %53 = arith.select %44, %52, %50 : vector<8x128xi1>, vector<8x128xf32>
      %54 = vector.shape_cast %34 : vector<8x1xf32> to vector<8x1xf32>
      %55 = vector.broadcast %54 : vector<8x1xf32> to vector<8x128xf32>
      %56 = arith.select %42, %55, %53 : vector<8x128xi1>, vector<8x128xf32>
      %57 = vector.shape_cast %33 : vector<8x1xf32> to vector<8x1xf32>
      %58 = vector.broadcast %57 : vector<8x1xf32> to vector<8x128xf32>
      %59 = arith.select %40, %58, %56 : vector<8x128xi1>, vector<8x128xf32>
      %c0_17 = arith.constant 0 : index
      %c0_18 = arith.constant 0 : index
      %60 = vector.load %arg6[%c0_17, %c0_18] : memref<8x128xf32, #tpu.memory_space<vmem>>, vector<8x128xf32>
      tpu.vector_store %arg6[%c0_17, %c0_18], %59 {strides = array<i32>} : memref<8x128xf32, #tpu.memory_space<vmem>>, vector<8x128xf32>,
    } else {
    }
    return
  }
  func.func @transform_0(%arg0: i32, %arg1: i32) -> (i32, i32) {
    %c0_i32 = arith.constant 0 : i32
    %c0_i32_0 = arith.constant 0 : i32
    return %arg0, %c0_i32 : i32, i32
  }
  func.func @transform_1(%arg0: i32, %arg1: i32) -> (i32, i32) {
    %c0_i32 = arith.constant 0 : i32
    %c0_i32_0 = arith.constant 0 : i32
    return %arg0, %c0_i32 : i32, i32
  }
  func.func @transform_2(%arg0: i32, %arg1: i32) -> (i32, i32) {
    %c0_i32 = arith.constant 0 : i32
    return %arg0, %arg1 : i32, i32
  }
  func.func @transform_3(%arg0: i32, %arg1: i32) -> (i32, i32) {
    %c0_i32 = arith.constant 0 : i32
    return %arg0, %arg1 : i32, i32
  }
  func.func @transform_4(%arg0: i32, %arg1: i32) -> (i32, i32) {
    %c0_i32 = arith.constant 0 : i32
    %c0_i32_0 = arith.constant 0 : i32
    return %arg0, %c0_i32 : i32, i32
  }
  func.func @transform_5(%arg0: i32, %arg1: i32) -> (i32, i32) {
    %c0_i32 = arith.constant 0 : i32
    return %arg0, %arg1 : i32, i32
  }
}

</mosaic_0001>

<bundles_post_ra>
// kernel: _act_step_jit.1
= control target key start
LH: loop header
LB: loop body
LE: loop exit
PB: predicated region body
PF: predicated region fallthrough
CT: control target
= control target key end

     0   :  { %11 = vsyncpa [#allocation3], 0  ;;  %s362_s0 = inlined_call_operand.vmem [shape: f32[8,1], index: 0, kind: input, shape index: {}]   ;;  %s363_s1 = inlined_call_operand.hbm [shape: f32[8,128], index: 1, kind: input, shape index: {}, may-alias: {1,4}]   ;;  %s364_s2 = inlined_call_operand.hbm [shape: f32[8,128], index: 2, kind: input, shape index: {}, may-alias: {2,5}]   ;;  %s365_s3 = inlined_call_operand.vmem [shape: bf16[8,128], index: 3, kind: input, shape index: {}]   ;;  %s366_s4 = inlined_call_operand.hbm [shape: f32[8,128], index: 4, kind: output, shape index: {0}, may-alias: {1,4}]   ;;  %s367_s5 = inlined_call_operand.hbm [shape: f32[8,128], index: 5, kind: output, shape index: {1}, may-alias: {2,5}]  }
   0x1   :  { %12 = vsyncpa [#allocation6], 0 }
   0x2   :  { %13 = vsyncpa [#allocation4], 0 }
   0x3   :  { %14 = vsyncpa [#allocation9], 0  ;;  %s266_s18 = smov [#allocation2]   ;;  %s267_s20 = smov [#allocation5]  }
   0x4   :  { %s23_s19 = sshll.u32 %s266_s18, 4  ;;  %s33_s21 = sshll.u32 %s267_s20, 4  ;;  %s24_s19 = int_to_ptr.vmem [resolvable:$true] %s23_s19  ;;  %s34_s21 = int_to_ptr.vmem [resolvable:$true] %s33_s21 }
   0x5   :  { %s170_s24 = scalar_lea.hbm %s363_s1, 128 }
   0x6   :  { %p171_p0 = scmp.ne.s32.totalorder %s363_s1, %s170_s24  ;;  %p174_p1 = scmp.lt.u32.totalorder %s170_s24, %s363_s1 }
   0x8   :  { %p176_p2 = pnand %p174_p1, %p171_p0 }
   0xa   :  { %179 = shalt.err (!%p176_p2)
}
   0xb   :  { %s180_s29 = scalar_lea.vmem %s24_s19, 128  ;;  %p185_p4 = scmp.lt.s32.totalorder %s24_s19, %s24_s19 }
   0xc   :  { %p181_p3 = scmp.ne.s32.totalorder %s24_s19, %s180_s29  ;;  %p186_p5 = scmp.lt.s32.totalorder %s180_s29, %s180_s29 }
   0xe   :  { %p187_p6 = por %p186_p5, %p185_p4 }
  0x10   :  { %p188_p7 = pnand %p187_p6, %p181_p3 }
  0x12   :  { %191 = shalt.err (!%p188_p7)
}
  0x13   :  { %26 = dma.hbm_to_vmem [thread:$0]  %s363_s1, 128, %s24_s19, [#allocation3]  }
  0x14   :  { %s192_s9 = scalar_lea.hbm %s364_s2, 128 }
  0x15   :  { %p193_p8 = scmp.ne.s32.totalorder %s364_s2, %s192_s9  ;;  %p196_p9 = scmp.lt.u32.totalorder %s192_s9, %s364_s2 }
  0x17   :  { %p198_p10 = pnand %p196_p9, %p193_p8 }
  0x19   :  { %201 = shalt.err (!%p198_p10)
}
  0x1a   :  { %s202_s14 = scalar_lea.vmem %s34_s21, 128  ;;  %p207_p12 = scmp.lt.s32.totalorder %s34_s21, %s34_s21 }
  0x1b   :  { %p203_p11 = scmp.ne.s32.totalorder %s34_s21, %s202_s14  ;;  %p208_p13 = scmp.lt.s32.totalorder %s202_s14, %s202_s14 }
  0x1d   :  { %p209_p0 = por %p208_p13, %p207_p12 }
  0x1f   :  { %p210_p1 = pnand %p209_p0, %p203_p11 }
  0x21   :  { %213 = shalt.err (!%p210_p1)
}
  0x22   :  { %36 = dma.hbm_to_vmem [thread:$0]  %s364_s2, 128, %s34_s21, [#allocation6]  }
  0x23   :  { %258 = dma.done.wait [#allocation3], 128  }
  0x24   :  { %259 = vsyncadd [#allocation3], 4294967168 }
  0x25   :  { %260 = dma.done.wait [#allocation6], 128  }
  0x26   :  { %261 = vsyncadd [#allocation6], 4294967168  ;;  %v268_v0 = vmov 0   ;;  %v46_v1 = vld [vmem:[#allocation2] sm:$0xff]  ;;  %v269_v3 = vmov 2   ;;  %s270_s16 = smov 127  }
  0x27   :  { %165 = vset.pattern.permute.xlu0 %v268_v0  ;;  %v47_v2 = vsub.f32 1.0, %v46_v1  ;;  %164 = vset.pattern.permute.xlu1 %v269_v3  ;;  %s271_s17 = smov 1   ;;  %v45_v4 = vld [vmem:[%s362_s0] sm:$0xff]  ;;  %v272_v6 = vmov 0.0   ;;  %s273_s2 = smov 3   ;;  %v274_v17 = vmov 3  }
  0x28   :  { %v48_v5 = vadd.f32 %v46_v1, %v45_v4  ;;  %v275_v18 = vmov 1   ;;  %v62_v24 = vld [vmem:[%s365_s3] sm:$0xf]  ;;  %v61_v26 = vld [vmem:[#allocation5] sm:$0xff]  ;;  %s276_s21 = smov [#allocation8]  }
  0x29   :  { %52 = vrot.lane.b32.xlu0 %v47_v2, %s270_s16  ;;  %82 = vrot.lane.b32.xlu1 %v47_v2, %s271_s17  ;;  %v63_v25 = vunpack.c.l.bf16 %v62_v24  ;;  %s138_s22 = sshll.u32 %s276_s21, 4  ;;  %s139_s22 = int_to_ptr.vmem [resolvable:$true] %s138_s22 }
  0x2a   :  { %vm49_vm0 = vcmp.ge.f32.partialorder %v48_v5, 0.999  ;;  %s214_s23 = scalar_lea.vmem %s139_s22, 128  ;;  %p219_p3 = scmp.lt.s32.totalorder %s139_s22, %s139_s22 }
  0x2b   :  { %v50_v7 = vsel %vm49_vm0, 1.0, %v272_v6  ;;  %p215_p2 = scmp.ne.s32.totalorder %s139_s22, %s214_s23  ;;  %p220_p4 = scmp.lt.s32.totalorder %s214_s23, %s214_s23 }
  0x2d   :  { %p221_p5 = por %p220_p4, %p219_p3 }
  0x2f   :  { %p222_p6 = pnand %p221_p5, %p215_p2 }
  0x9b   :  { %v53_v8 = vpop.permute.xlu0 %52  ;;  %v83_v9 = vpop.permute.xlu1 %82 }
  0x9c   :  { %v55_v10 = vmul.f32 %v53_v8, %v50_v7  ;;  %v85_v13 = vadd.f32 %v83_v9, %v46_v1 }
  0x9e   :  { %v56_v11 = vmul.f32 %v55_v10, %v47_v2  ;;  %v57_v12 = vsub.f32 1.0, %v55_v10  ;;  %78 = vrot.lane.b32.xlu1 %v55_v10, %s271_s17 }
  0xa0   :  { %v58_v14 = vmul.f32 %v57_v12, %v45_v4  ;;  %87 = vrot.lane.b32.xlu0 %v56_v11, %s273_s2 }
  0xa2   :  { %v59_v15 = vadd.f32 %v58_v14, %v56_v11  ;;  %105 = vperm.xlu1 %164, %v85_v13  }
  0xa4   :  { %v60_v16 = vmul.f32 %v59_v15, %v53_v8 }
  0xa6   :  { %66 = vperm.xlu0 %165, %v60_v16   ;;  %166 = vset.pattern.permute.xlu1 %v274_v17  ;;  %v76_v23 = vadd.f32 %v60_v16, %v46_v1 }
  0xaa   :  { %167 = vset.pattern.permute.xlu0 %v275_v18 }
 0x110   :  { %v79_v19 = vpop.permute.xlu1 %78 }
 0x111   :  { %v81_v20 = vmax.f32 %v46_v1, %v79_v19 }
 0x112   :  { %v88_v21 = vpop.permute.xlu0 %87 }
 0x113   :  { %v90_v22 = vadd.f32 %v88_v21, %v46_v1  ;;  %111 = vperm.xlu0 %167, %v81_v20  }
 0x115   :  { %99 = vperm.xlu1 %166, %v90_v22  }
 0x117   :  { %169 = vset.pattern.permute.xlu0 %v268_v0 }
 0x119   :  { %168 = vset.pattern.permute.xlu1 %v268_v0 }
 0x11a   :  { %117 = vperm.xlu1 %168, %v76_v23  }
 0x125   :  { %v67_v27 = vpop.permute.xlu0 %66 }
 0x126   :  { %v69_v28 = vmul.f32 %v67_v27, %v63_v25 }
 0x128   :  { %v70_v29 = vadd.f32 %v69_v28, %v61_v26 }
 0x12a   :  { %71 = vst [vmem:[#allocation8] sm:$0xff] %v70_v29 }
 0x12b   :  { %225 = shalt.err (!%p222_p6)
}
 0x12c   :  { %s226_s3 = scalar_lea.hbm %s367_s5, 128 }
 0x12d   :  { %p227_p7 = scmp.ne.s32.totalorder %s367_s5, %s226_s3  ;;  %p230_p8 = scmp.lt.u32.totalorder %s226_s3, %s367_s5 }
 0x12f   :  { %p232_p9 = pnand %p230_p8, %p227_p7 }
 0x131   :  { %235 = shalt.err (!%p232_p9)
}
 0x132   :  { %141 = dma.vmem_to_hbm [thread:$0]  %s139_s22, 128, %s367_s5, [#allocation9]   ;;  %v91_v30 = vlaneseq  ;;  %v106_v31 = vpop.permute.xlu1 %105 }
 0x133   :  { %s277_s7 = smov [#allocation7]  }
 0x134   :  { %v92_v32 = vand.u32 127, %v91_v30  ;;  %s128_s8 = sshll.u32 %s277_s7, 4  ;;  %s129_s8 = int_to_ptr.vmem [resolvable:$true] %s128_s8 }
 0x135   :  { %s236_s9 = scalar_lea.vmem %s129_s8, 128  ;;  %p241_p11 = scmp.lt.s32.totalorder %s129_s8, %s129_s8 }
 0x136   :  { %vm96_vm1 = vcmp.eq.s32.totalorder %v92_v32, 3  ;;  %vm95_vm2 = vcmp.eq.s32.totalorder %v92_v32, 2  ;;  %vm94_vm3 = vcmp.eq.s32.totalorder %v92_v32, 1  ;;  %vm93_vm4 = vcmp.eq.s32.totalorder %v92_v32, 0  ;;  %p237_p10 = scmp.ne.s32.totalorder %s129_s8, %s236_s9  ;;  %p242_p12 = scmp.lt.s32.totalorder %s236_s9, %s236_s9 }
 0x138   :  { %p243_p13 = por %p242_p12, %p241_p11 }
 0x13a   :  { %p244_p0 = pnand %p243_p13, %p237_p10 }
 0x192   :  { %v112_v36 = vpop.permute.xlu0 %111 }
 0x194   :  { %v100_v33 = vpop.permute.xlu1 %99 }
 0x195   :  { %v102_v34 = vsel %vm96_vm1, %v100_v33, 0.0 }
 0x196   :  { %v108_v35 = vsel %vm95_vm2, %v106_v31, %v102_v34 }
 0x197   :  { %v114_v37 = vsel %vm94_vm3, %v112_v36, %v108_v35 }
 0x199   :  { %v118_v38 = vpop.permute.xlu1 %117 }
 0x19a   :  { %v120_v39 = vsel %vm93_vm4, %v118_v38, %v114_v37 }
 0x19b   :  { %121 = vst [vmem:[#allocation7] sm:$0xff] %v120_v39 }
 0x19c   :  { %247 = shalt.err (!%p244_p0)
}
 0x19d   :  { %s248_s11 = scalar_lea.hbm %s366_s4, 128 }
 0x19e   :  { %p249_p1 = scmp.ne.s32.totalorder %s366_s4, %s248_s11  ;;  %p252_p2 = scmp.lt.u32.totalorder %s248_s11, %s366_s4 }
 0x1a0   :  { %p254_p3 = pnand %p252_p2, %p249_p1 }
 0x1a2   :  { %257 = shalt.err (!%p254_p3)
}
 0x1a3   :  { %131 = dma.vmem_to_hbm [thread:$0]  %s129_s8, 128, %s366_s4, [#allocation4]  }
 0x1a4   :  { %262 = dma.done.wait [#allocation4], 128  }
 0x1a5   :  { %263 = vsyncadd [#allocation4], 4294967168 }
 0x1a6   :  { %264 = dma.done.wait [#allocation9], 128  }
 0x1a7   :  { %265 = vsyncadd [#allocation9], 4294967168 }
 0x1a8   :  { %148 = vsyncpa [#allocation3], 1 }
 0x1a9   :  { %149 = vsyncpa [#allocation6], 1 }
 0x1aa   :  { %150 = vsyncpa [#allocation4], 1 }
 0x1ab   :  { %151 = vsyncpa [#allocation9], 1 }

</bundles_post_ra>
